<compile_context>
chip_gen: v7x
topology: tpu7x:2x2x1
jax: 0.10.0
libtpu: 0.0.40
codegen_flags: <defaults>
</compile_context>

<pallas_src>
import jax
import jax.numpy as jnp
from jax.experimental import pallas as pl
from jax.experimental.pallas import tpu as pltpu  # noqa: F401  (TPU backend)

# ---- static problem sizes ----
B, C, H, W = 2, 3, 32, 32
KH = KW = 5
STRIDE = 2
OH = (H - KH) // STRIDE + 1          # 14
OW = (W - KW) // STRIDE + 1          # 14
PH, PW = OH // 2, OW // 2            # 7, 7   (MaxPool2d(2))
P = PH * PW                          # 49 pooled positions per image
PPAD = 64                            # 49 -> 64 so each batch is one 64-lane block
K = C * KH * KW                      # 75 patch length, flattened (C, KH, KW)
CONV_OUT = 6
OUT_SIZE = 10
FEATS = CONV_OUT * P                 # 294 features into the linear layer
MEMBERS = 4                          # 2x2 pool-window members
LANES = MEMBERS * B * PPAD           # 512 conv-matmul columns (member, batch, pos)
LBLK = 128                           # lane block per (batch, conv-channel) FC group
FC_COLS = B * CONV_OUT * LBLK        # 1536 padded block-diagonal FC weight columns


# ---------------- fused Pallas kernel ----------------
def cnn_fused_kernel(pt_ref, cw_ref, fw_ref, fb_ref, o_ref):
    """pt_ref: (K+1, 512) bf16 patches^T (last row = ones for the folded conv bias),
               columns ordered (member, batch, pos[padded to 64]);
       cw_ref: (6, K+1) bf16 conv weight with bias column appended;
       fw_ref: (128, 1536) bf16 block-diagonal FC weight, each (batch, channel) block
               padded to 128 lanes (padded rows/cols are zero);
       fb_ref: (1, 128) f32 FC bias padded with zeros beyond lane 10;
       o_ref:  (B, 10) f32 softmax probabilities."""
    # Conv2d(3,6,5,stride=2) + bias as ONE lane-dense bf16 matmul over all pool members.
    y = jnp.dot(cw_ref[...], pt_ref[...], preferred_element_type=jnp.float32)  # (6, 512) f32
    y = jnp.maximum(y, 0.0)                                                     # ReLU

    # MaxPool2d(2): max over the 4 members; each member is a 128-lane-aligned block.
    blk = B * PPAD                                              # 128
    pooled = jnp.maximum(jnp.maximum(y[:, 0:blk], y[:, blk:2 * blk]),
                         jnp.maximum(y[:, 2 * blk:3 * blk], y[:, 3 * blk:4 * blk]))
    # pooled[c, b*64 + p] == maxpool(relu(conv(x)))[b, c, p//PW, p%PW]   (p < 49)
    # TODO(synk): Dropout2d(0.4) is stochastic in train mode; identity here (eval).

    # Linear: flatten permutation + per-batch selection folded into fw_ref; one matmul.
    t = jnp.dot(pooled.astype(jnp.bfloat16), fw_ref[...],
                preferred_element_type=jnp.float32)             # (6, 1536) f32

    # Diagonal pickup: every slice is a whole 128-lane block -> full-width VPU adds.
    rows = []
    for b in range(B):                                          # static unroll
        acc = fb_ref[...]                                       # (1, 128)
        for c in range(CONV_OUT):
            s = (b * CONV_OUT + c) * LBLK
            acc = acc + t[c:c + 1, s:s + LBLK]
        rows.append(acc)
    logits = jnp.concatenate(rows, axis=0)                      # (B, 128)

    # Softmax(dim=1) over the 10 valid lanes (lane-masked; padded lanes contribute 0).
    lane = jax.lax.broadcasted_iota(jnp.int32, logits.shape, 1)
    valid = lane < OUT_SIZE
    m = jnp.max(jnp.where(valid, logits, -jnp.inf), axis=1, keepdims=True)
    e = jnp.where(valid, jnp.exp(logits - m), 0.0)
    denom = jnp.sum(e, axis=1, keepdims=True)
    probs = e * pl.reciprocal(denom, approx=True)
    o_ref[...] = probs[:, :OUT_SIZE]


# ---------------- JAX wrapper ----------------
@jax.jit
def cnn_forward(x, conv_w_k, fc_w_k, fc_b_k):
    x = x.astype(jnp.float32)
    # Single im2col op (one-hot conv; DEFAULT precision is exact for pure data movement).
    # Feature dim is channel-major: index = c*25 + kh*5 + kw.
    patches = jax.lax.conv_general_dilated_patches(
        x, filter_shape=(KH, KW), window_strides=(STRIDE, STRIDE),
        padding="VALID")                                        # (B, K, OH, OW)
    # Rearrange to (K, member, batch, pooled-pos), pad 49 -> 64 positions, append the
    # ones-row for the folded conv bias.  All layout ops on a bf16 tensor (<80 KB).
    p = patches.astype(jnp.bfloat16).reshape(B, K, PH, 2, PW, 2)
    p = jnp.transpose(p, (1, 3, 5, 0, 2, 4))                    # (K, dh, dw, B, PH, PW)
    p = p.reshape(K, MEMBERS, B, P)
    p = jnp.pad(p, ((0, 0), (0, 0), (0, 0), (0, PPAD - P)))     # zero-pad positions
    pt = p.reshape(K, LANES)
    patches_t = jnp.pad(pt, ((0, 1), (0, 0)), constant_values=1.0)   # (76, 512) bf16

    return pl.pallas_call(
        cnn_fused_kernel,
        out_shape=jax.ShapeDtypeStruct((B, OUT_SIZE), jnp.float32),
        grid=(1,),
        in_specs=[
            pl.BlockSpec((K + 1, LANES), lambda i: (0, 0)),
            pl.BlockSpec((CONV_OUT, K + 1), lambda i: (0, 0)),
            pl.BlockSpec((B * PPAD, FC_COLS), lambda i: (0, 0)),
            pl.BlockSpec((1, LBLK), lambda i: (0, 0)),
        ],
        out_specs=pl.BlockSpec((B, OUT_SIZE), lambda i: (0, 0)),
    )(patches_t, conv_w_k, fc_w_k, fc_b_k)


# ---------------- deterministic parameters ----------------
def init_torch_layout_params():
    """Parameters in PyTorch's native layouts."""
    k1, k2, k3, k4 = jax.random.split(jax.random.PRNGKey(0), 4)
    conv_w = 0.1 * jax.random.normal(k1, (CONV_OUT, C, KH, KW), jnp.float32)  # Conv2d.weight
    conv_b = 0.1 * jax.random.normal(k2, (CONV_OUT,), jnp.float32)            # Conv2d.bias
    fc_w = 0.05 * jax.random.normal(k3, (OUT_SIZE, FEATS), jnp.float32)       # Linear.weight
    fc_b = 0.05 * jax.random.normal(k4, (OUT_SIZE,), jnp.float32)             # Linear.bias
    return conv_w, conv_b, fc_w, fc_b


def pack_kernel_params(conv_w, conv_b, fc_w, fc_b):
    """Fold every layout permutation into the weights once, at init (zero runtime cost)."""
    # Conv weight (6, 75) in (C,KH,KW) column order, bias folded in as an extra column.
    cw = conv_w.reshape(CONV_OUT, K)
    conv_w_k = jnp.concatenate([cw, conv_b.reshape(CONV_OUT, 1)], axis=1)     # (6, 76)
    conv_w_k = conv_w_k.astype(jnp.bfloat16)

    # fc_w consumes torch.flatten(x, 1) of an NCHW tensor: feature index = c*49 + p.
    # Re-pack to a padded block-diagonal matrix: rows = (batch, pos[pad 64]),
    # cols = (batch, conv-channel, out[pad 128]); all padded rows/cols are zero,
    # so padded pooled positions never contribute (invariant survives the bf16 cast).
    w3 = fc_w.reshape(OUT_SIZE, CONV_OUT, P)                                  # [o, c, p]
    blk = jnp.transpose(w3, (2, 1, 0))                                        # (49, 6, 10)
    blk = jnp.pad(blk, ((0, PPAD - P), (0, 0), (0, LBLK - OUT_SIZE)))         # (64, 6, 128)
    blk = blk.reshape(PPAD, CONV_OUT * LBLK)                                  # (64, 768)
    fc_w_k = jnp.zeros((B * PPAD, FC_COLS), jnp.float32)
    for b in range(B):
        fc_w_k = fc_w_k.at[b * PPAD:(b + 1) * PPAD,
                           b * CONV_OUT * LBLK:(b + 1) * CONV_OUT * LBLK].set(blk)
    fc_w_k = fc_w_k.astype(jnp.bfloat16)

    fc_b_k = jnp.pad(fc_b.reshape(1, OUT_SIZE),
                     ((0, 0), (0, LBLK - OUT_SIZE))).astype(jnp.float32)      # (1, 128)
    return conv_w_k, fc_w_k, fc_b_k


# ---------------- pure-XLA reference (PyTorch forward, eval mode) ----------------
def reference_forward(x, conv_w, conv_b, fc_w, fc_b):
    y = jax.lax.conv_general_dilated(
        x, conv_w, (STRIDE, STRIDE), "VALID",
        dimension_numbers=("NCHW", "OIHW", "NCHW"),
        precision=jax.lax.Precision.HIGHEST)
    y = jnp.maximum(y + conv_b[None, :, None, None], 0.0)
    y = jax.lax.reduce_window(y, -jnp.inf, jax.lax.max,
                              (1, 1, 2, 2), (1, 1, 2, 2), "VALID")
    feats = y.reshape(B, FEATS)                              # torch.flatten(x, 1)
    logits = feats @ fc_w.T + fc_b[None, :]
    return jax.nn.softmax(logits, axis=1)


if __name__ == "__main__":
    x = jax.random.normal(jax.random.PRNGKey(0), (B, C, H, W), jnp.float32)  # NCHW
    pt_params = init_torch_layout_params()
    kernel_params = pack_kernel_params(*pt_params)

    y = cnn_forward(x, *kernel_params)
    y = jax.block_until_ready(y)

    assert y.shape == (B, OUT_SIZE)
    assert bool(jnp.all(jnp.isfinite(y)))
    # softmax rows sum to ~1 (loose tolerance: approx reciprocal in the kernel)
    assert jnp.allclose(jnp.sum(y, axis=1), 1.0, atol=1e-2)
    # parity with an independent f32 XLA reference of the PyTorch forward (eval mode);
    # kernel uses bf16 MXU inputs with f32 accumulation.
    y_ref = reference_forward(x, *pt_params)
    assert jnp.allclose(y, y_ref, atol=2e-2), float(jnp.max(jnp.abs(y - y_ref)))
    print("KERNEL_OK")
</pallas_src>

<mosaic_0001>
module attributes {stable_mosaic.version = 11 : i64} {
  func.func @cnn_fused_kernel(%arg0: i32, %arg1: memref<76x512xbf16, #tpu.memory_space<vmem>>, %arg2: memref<6x76xbf16, #tpu.memory_space<vmem>>, %arg3: memref<128x1536xbf16, #tpu.memory_space<vmem>>, %arg4: memref<1x128xf32, #tpu.memory_space<vmem>>, %arg5: memref<2x10xf32, #tpu.memory_space<vmem>>) attributes {dimension_semantics = [#tpu.dimension_semantics<arbitrary>], iteration_bounds = array<i64: 1>, scalar_prefetch = 0 : i64, scratch_operands = 0 : i64, tpu.core_type = #tpu.core_type<tc>, window_params = [{pipeline_mode = #tpu.pipeline_mode<synchronous>, transform_indices = @transform_0, window_bounds = array<i64: 76, 512>}, {pipeline_mode = #tpu.pipeline_mode<synchronous>, transform_indices = @transform_1, window_bounds = array<i64: 6, 76>}, {pipeline_mode = #tpu.pipeline_mode<synchronous>, transform_indices = @transform_2, window_bounds = array<i64: 128, 1536>}, {pipeline_mode = #tpu.pipeline_mode<synchronous>, transform_indices = @transform_3, window_bounds = array<i64: 1, 128>}, {pipeline_mode = #tpu.pipeline_mode<synchronous>, transform_indices = @transform_4, window_bounds = array<i64: 2, 10>}]} {
    %c0 = arith.constant 0 : index
    %c0_0 = arith.constant 0 : index
    %0 = vector.load %arg2[%c0, %c0_0] : memref<6x76xbf16, #tpu.memory_space<vmem>>, vector<6x76xbf16>
    %c0_1 = arith.constant 0 : index
    %c0_2 = arith.constant 0 : index
    %1 = vector.load %arg1[%c0_1, %c0_2] : memref<76x512xbf16, #tpu.memory_space<vmem>>, vector<76x512xbf16>
    %cst = arith.constant dense<0.000000e+00> : vector<6x512xf32>
    %2 = tpu.matmul %0, %1, %cst {dimension_numbers = #tpu.dot_dimension_numbers<[1], [0], [0], [1], [0, 0, 1, 1], [], []>} : vector<6x76xbf16>, vector<76x512xbf16>, vector<6x512xf32> -> vector<6x512xf32>
    %cst_3 = arith.constant 0.000000e+00 : f32
    %3 = vector.broadcast %cst_3 : f32 to vector<6x512xf32>
    %4 = arith.maximumf %2, %3 : vector<6x512xf32>
    %5 = vector.extract_strided_slice %4 {offsets = [0, 0], sizes = [6, 128], strides = [1, 1]} : vector<6x512xf32> to vector<6x128xf32>
    %6 = vector.extract_strided_slice %4 {offsets = [0, 128], sizes = [6, 128], strides = [1, 1]} : vector<6x512xf32> to vector<6x128xf32>
    %7 = arith.maximumf %5, %6 : vector<6x128xf32>
    %8 = vector.extract_strided_slice %4 {offsets = [0, 256], sizes = [6, 128], strides = [1, 1]} : vector<6x512xf32> to vector<6x128xf32>
    %9 = vector.extract_strided_slice %4 {offsets = [0, 384], sizes = [6, 128], strides = [1, 1]} : vector<6x512xf32> to vector<6x128xf32>
    %10 = arith.maximumf %8, %9 : vector<6x128xf32>
    %11 = arith.maximumf %7, %10 : vector<6x128xf32>
    %12 = arith.truncf %11 : vector<6x128xf32> to vector<6x128xbf16>
    %c0_4 = arith.constant 0 : index
    %c0_5 = arith.constant 0 : index
    %13 = vector.load %arg3[%c0_4, %c0_5] : memref<128x1536xbf16, #tpu.memory_space<vmem>>, vector<128x1536xbf16>
    %cst_6 = arith.constant dense<0.000000e+00> : vector<6x1536xf32>
    %14 = tpu.matmul %12, %13, %cst_6 {dimension_numbers = #tpu.dot_dimension_numbers<[1], [0], [0], [1], [0, 0, 1, 1], [], []>} : vector<6x128xbf16>, vector<128x1536xbf16>, vector<6x1536xf32> -> vector<6x1536xf32>
    %c0_7 = arith.constant 0 : index
    %c0_8 = arith.constant 0 : index
    %15 = vector.load %arg4[%c0_7, %c0_8] : memref<1x128xf32, #tpu.memory_space<vmem>>, vector<1x128xf32>
    %16 = vector.extract_strided_slice %14 {offsets = [0, 0], sizes = [1, 128], strides = [1, 1]} : vector<6x1536xf32> to vector<1x128xf32>
    %17 = arith.addf %15, %16 : vector<1x128xf32>
    %18 = vector.extract_strided_slice %14 {offsets = [1, 128], sizes = [1, 128], strides = [1, 1]} : vector<6x1536xf32> to vector<1x128xf32>
    %19 = arith.addf %17, %18 : vector<1x128xf32>
    %20 = vector.extract_strided_slice %14 {offsets = [2, 256], sizes = [1, 128], strides = [1, 1]} : vector<6x1536xf32> to vector<1x128xf32>
    %21 = arith.addf %19, %20 : vector<1x128xf32>
    %22 = vector.extract_strided_slice %14 {offsets = [3, 384], sizes = [1, 128], strides = [1, 1]} : vector<6x1536xf32> to vector<1x128xf32>
    %23 = arith.addf %21, %22 : vector<1x128xf32>
    %24 = vector.extract_strided_slice %14 {offsets = [4, 512], sizes = [1, 128], strides = [1, 1]} : vector<6x1536xf32> to vector<1x128xf32>
    %25 = arith.addf %23, %24 : vector<1x128xf32>
    %26 = vector.extract_strided_slice %14 {offsets = [5, 640], sizes = [1, 128], strides = [1, 1]} : vector<6x1536xf32> to vector<1x128xf32>
    %27 = arith.addf %25, %26 : vector<1x128xf32>
    %c0_9 = arith.constant 0 : index
    %c0_10 = arith.constant 0 : index
    %28 = vector.load %arg4[%c0_9, %c0_10] : memref<1x128xf32, #tpu.memory_space<vmem>>, vector<1x128xf32>
    %29 = vector.extract_strided_slice %14 {offsets = [0, 768], sizes = [1, 128], strides = [1, 1]} : vector<6x1536xf32> to vector<1x128xf32>
    %30 = arith.addf %28, %29 : vector<1x128xf32>
    %31 = vector.extract_strided_slice %14 {offsets = [1, 896], sizes = [1, 128], strides = [1, 1]} : vector<6x1536xf32> to vector<1x128xf32>
    %32 = arith.addf %30, %31 : vector<1x128xf32>
    %33 = vector.extract_strided_slice %14 {offsets = [2, 1024], sizes = [1, 128], strides = [1, 1]} : vector<6x1536xf32> to vector<1x128xf32>
    %34 = arith.addf %32, %33 : vector<1x128xf32>
    %35 = vector.extract_strided_slice %14 {offsets = [3, 1152], sizes = [1, 128], strides = [1, 1]} : vector<6x1536xf32> to vector<1x128xf32>
    %36 = arith.addf %34, %35 : vector<1x128xf32>
    %37 = vector.extract_strided_slice %14 {offsets = [4, 1280], sizes = [1, 128], strides = [1, 1]} : vector<6x1536xf32> to vector<1x128xf32>
    %38 = arith.addf %36, %37 : vector<1x128xf32>
    %39 = vector.extract_strided_slice %14 {offsets = [5, 1408], sizes = [1, 128], strides = [1, 1]} : vector<6x1536xf32> to vector<1x128xf32>
    %40 = arith.addf %38, %39 : vector<1x128xf32>
    %41 = tpu.concatenate %27, %40 in 0 : vector<1x128xf32>, vector<1x128xf32> -> vector<2x128xf32>
    %42 = tpu.iota {dimensions = array<i32: 1>} : vector<2x128xi32>
    %c10_i32 = arith.constant 10 : i32
    %43 = vector.broadcast %c10_i32 : i32 to vector<2x128xi32>
    %44 = arith.cmpi slt, %42, %43 : vector<2x128xi32>
    %cst_11 = arith.constant 0xFF800000 : f32
    %45 = vector.broadcast %cst_11 : f32 to vector<2x128xf32>
    %46 = arith.select %44, %41, %45 : vector<2x128xi1>, vector<2x128xf32>
    %cst_12 = arith.constant dense<0xFF800000> : vector<2xf32>
    %47 = vector.multi_reduction <maximumf>, %46, %cst_12 [1] : vector<2x128xf32> to vector<2xf32>
    %48 = vector.shape_cast %47 : vector<2xf32> to vector<2x1xf32>
    %49 = vector.broadcast %48 : vector<2x1xf32> to vector<2x128xf32>
    %50 = arith.subf %41, %49 : vector<2x128xf32>
    %51 = math.exp %50 : vector<2x128xf32>
    %cst_13 = arith.constant 0.000000e+00 : f32
    %52 = vector.broadcast %cst_13 : f32 to vector<2x128xf32>
    %53 = arith.select %44, %51, %52 : vector<2x128xi1>, vector<2x128xf32>
    %cst_14 = arith.constant dense<0.000000e+00> : vector<2xf32>
    %54 = vector.multi_reduction <add>, %53, %cst_14 [1] : vector<2x128xf32> to vector<2xf32>
    %55 = vector.shape_cast %54 : vector<2xf32> to vector<2x1xf32>
    %56 = tpu.reciprocal %55 {approx = true} : vector<2x1xf32> -> vector<2x1xf32>
    %57 = vector.broadcast %56 : vector<2x1xf32> to vector<2x128xf32>
    %58 = arith.mulf %53, %57 : vector<2x128xf32>
    %59 = vector.extract_strided_slice %58 {offsets = [0, 0], sizes = [2, 10], strides = [1, 1]} : vector<2x128xf32> to vector<2x10xf32>
    %c0_15 = arith.constant 0 : index
    %c0_16 = arith.constant 0 : index
    %60 = vector.load %arg5[%c0_15, %c0_16] : memref<2x10xf32, #tpu.memory_space<vmem>>, vector<2x10xf32>
    tpu.vector_store %arg5[%c0_15, %c0_16], %59 {strides = array<i32>} : memref<2x10xf32, #tpu.memory_space<vmem>>, vector<2x10xf32>,
    return
  }
  func.func @transform_0(%arg0: i32) -> (i32, i32) {
    %c0_i32 = arith.constant 0 : i32
    %c0_i32_0 = arith.constant 0 : i32
    %c0_i32_1 = arith.constant 0 : i32
    return %c0_i32, %c0_i32_0 : i32, i32
  }
  func.func @transform_1(%arg0: i32) -> (i32, i32) {
    %c0_i32 = arith.constant 0 : i32
    %c0_i32_0 = arith.constant 0 : i32
    %c0_i32_1 = arith.constant 0 : i32
    return %c0_i32, %c0_i32_0 : i32, i32
  }
  func.func @transform_2(%arg0: i32) -> (i32, i32) {
    %c0_i32 = arith.constant 0 : i32
    %c0_i32_0 = arith.constant 0 : i32
    %c0_i32_1 = arith.constant 0 : i32
    return %c0_i32, %c0_i32_0 : i32, i32
  }
  func.func @transform_3(%arg0: i32) -> (i32, i32) {
    %c0_i32 = arith.constant 0 : i32
    %c0_i32_0 = arith.constant 0 : i32
    %c0_i32_1 = arith.constant 0 : i32
    return %c0_i32, %c0_i32_0 : i32, i32
  }
  func.func @transform_4(%arg0: i32) -> (i32, i32) {
    %c0_i32 = arith.constant 0 : i32
    %c0_i32_0 = arith.constant 0 : i32
    %c0_i32_1 = arith.constant 0 : i32
    return %c0_i32, %c0_i32_0 : i32, i32
  }
}

</mosaic_0001>

<bundles_post_ra>
// kernel: cnn_forward.1
= control target key start
LH: loop header
LB: loop body
LE: loop exit
PB: predicated region body
PF: predicated region fallthrough
CT: control target
= control target key end

     0   :  { %v1618_v2 = vmov 0   ;;  %vm140_vm0 = vcmask 1045504   ;;  %vm136_vm1 = vcmask 621568   ;;  %s2056_s0 = inlined_call_operand.vmem [shape: bf16[76,512], index: 0, kind: input, shape index: {}]   ;;  %s2057_s1 = inlined_call_operand.vmem [shape: bf16[6,76], index: 1, kind: input, shape index: {}]   ;;  %s2058_s2 = inlined_call_operand.vmem [shape: bf16[128,1536], index: 2, kind: input, shape index: {}]   ;;  %s2059_s3 = inlined_call_operand.vmem [shape: f32[1,128], index: 3, kind: input, shape index: {}]   ;;  %s2060_s4 = inlined_call_operand.hbm [shape: f32[2,10], index: 4, kind: output, shape index: {}]  }
   0x1   :  { %v1416_v0 = vld [vmem:[%s2056_s0 + $0x4] ss:$16 sps:$4 sm:$0xff]   ;;  %v1418_v1 = vld [vmem:[%s2056_s0 + $0xc] ss:$16 sps:$4 sm:$0xff]   ;;  %185 = vmatprep.mubr.bf16.mxu0 %v1618_v2  ;;  %226 = vmatprep.mubr.bf16.mxu1 %v1618_v2  ;;  %v1420_v3 = vld [vmem:[%s2056_s0] ss:$16 sps:$4 sm:$0xff]  }
   0x2   :  { %153 = vmatprep.subr.bf16.mxu0 %v1416_v0  ;;  %v1421_v4 = vld [vmem:[%s2056_s0 + $0x8] ss:$16 sps:$4 sm:$0xff]   ;;  %194 = vmatprep.subr.bf16.mxu1 %v1418_v1  ;;  %v1422_v5 = vld [vmem:[%s2056_s0 + $0x24] ss:$16 sps:$4 sm:$0xff]   ;;  %v1424_v6 = vld [vmem:[%s2056_s0 + $0x2c] ss:$16 sps:$4 sm:$0xff]  }
   0x3   :  { %154 = vmatpush1.bf16.msra.mxu0 %v1420_v3  ;;  %195 = vmatpush1.bf16.msra.mxu1 %v1421_v4  ;;  %v1426_v7 = vld [vmem:[%s2056_s0 + $0x20] ss:$16 sps:$4 sm:$0xff]   ;;  %v1427_v8 = vld [vmem:[%s2056_s0 + $0x28] ss:$16 sps:$4 sm:$0xff]   ;;  %v1428_v9 = vld [vmem:[%s2056_s0 + $0x44] ss:$16 sps:$4 sm:$0xff]  }
   0x4   :  { %155 = vmatprep.subr.bf16.mxu0 %v1422_v5  ;;  %196 = vmatprep.subr.bf16.mxu1 %v1424_v6  ;;  %v1430_v10 = vld [vmem:[%s2056_s0 + $0x4c] ss:$16 sps:$4 sm:$0xff]   ;;  %v1432_v11 = vld [vmem:[%s2056_s0 + $0x40] ss:$16 sps:$4 sm:$0xff]   ;;  %v1433_v12 = vld [vmem:[%s2056_s0 + $0x48] ss:$16 sps:$4 sm:$0xff]  }
   0x5   :  { %v1434_v13 = vld [vmem:[%s2056_s0 + $0x64] ss:$16 sps:$4 sm:$0xff]   ;;  %v1436_v14 = vld [vmem:[%s2056_s0 + $0x6c] ss:$16 sps:$4 sm:$0xff]   ;;  %v1438_v15 = vld [vmem:[%s2056_s0 + $0x60] ss:$16 sps:$4 sm:$0xff]  }
   0x6   :  { %v1439_v16 = vld [vmem:[%s2056_s0 + $0x68] ss:$16 sps:$4 sm:$0xff]   ;;  %v1440_v17 = vld [vmem:[%s2056_s0 + $0x84] ss:$16 sps:$4 sm:$0x3f]  }
   0x7   :  { %156 = vmatpush1.bf16.msra.mxu0 %v1426_v7  ;;  %197 = vmatpush1.bf16.msra.mxu1 %v1427_v8  ;;  %v1442_v18 = vld [vmem:[%s2056_s0 + $0x8c] ss:$16 sps:$4 sm:$0x3f]   ;;  %v1444_v19 = vld [vmem:[%s2056_s0 + $0x80] ss:$16 sps:$4 sm:$0x3f]  }
   0x8   :  { %157 = vmatprep.subr.bf16.mxu0 %v1428_v9  ;;  %198 = vmatprep.subr.bf16.mxu1 %v1430_v10  ;;  %v1445_v20 = vld [vmem:[%s2056_s0 + $0x88] ss:$16 sps:$4 sm:$0x3f]   ;;  %v142_v21 = vsel %vm140_vm0, %v1444_v19, 0  ;;  %v1448_v23 = vld [vmem:[%s2058_s2 + $0x4] ss:$48 sps:$4 sm:$0xff]  }
   0x9   :  { %v148_v22 = vsel %vm140_vm0, %v1445_v20, 0  ;;  %v1451_v24 = vld [vmem:[%s2058_s2 + $0xc] ss:$48 sps:$4 sm:$0xff]   ;;  %v19_v25 = vld [vmem:[%s2057_s1] sm:$0x7] }
   0xa   :  { %v1446_v26 = vld [vmem:[%s2058_s2] ss:$48 sps:$4 sm:$0xff]   ;;  %v1449_v27 = vld [vmem:[%s2058_s2 + $0x8] ss:$48 sps:$4 sm:$0xff]   ;;  %v1454_v28 = vld [vmem:[%s2058_s2 + $0x64] ss:$48 sps:$4 sm:$0xff]  }
   0xb   :  { %158 = vmatpush1.bf16.msra.mxu0 %v1432_v11  ;;  %199 = vmatpush1.bf16.msra.mxu1 %v1433_v12  ;;  %v1457_v29 = vld [vmem:[%s2058_s2 + $0x6c] ss:$48 sps:$4 sm:$0xff]   ;;  %v1452_v30 = vld [vmem:[%s2058_s2 + $0x60] ss:$48 sps:$4 sm:$0xff]   ;;  %v1455_v31 = vld [vmem:[%s2058_s2 + $0x68] ss:$48 sps:$4 sm:$0xff]  }
   0xc   :  { %159 = vmatprep.subr.bf16.mxu0 %v1434_v13  ;;  %200 = vmatprep.subr.bf16.mxu1 %v1436_v14  ;;  %v1460_v32 = vld [vmem:[%s2058_s2 + $0xc4] ss:$48 sps:$4 sm:$0xff]   ;;  %v1463_v33 = vld [vmem:[%s2058_s2 + $0xcc] ss:$48 sps:$4 sm:$0xff]   ;;  %v1458_v34 = vld [vmem:[%s2058_s2 + $0xc0] ss:$48 sps:$4 sm:$0xff]  }
   0xd   :  { %v1461_v35 = vld [vmem:[%s2058_s2 + $0xc8] ss:$48 sps:$4 sm:$0xff]   ;;  %v1466_v36 = vld [vmem:[%s2058_s2 + $0x124] ss:$48 sps:$4 sm:$0xff]   ;;  %v1469_v37 = vld [vmem:[%s2058_s2 + $0x12c] ss:$48 sps:$4 sm:$0xff]  }
   0xe   :  { %v1464_v38 = vld [vmem:[%s2058_s2 + $0x120] ss:$48 sps:$4 sm:$0xff]   ;;  %v1467_v39 = vld [vmem:[%s2058_s2 + $0x128] ss:$48 sps:$4 sm:$0xff]   ;;  %v1472_v40 = vld [vmem:[%s2058_s2 + $0x184] ss:$48 sps:$4 sm:$0xff]  }
   0xf   :  { %160 = vmatpush1.bf16.msra.mxu0 %v1438_v15  ;;  %201 = vmatpush1.bf16.msra.mxu1 %v1439_v16  ;;  %v1475_v41 = vld [vmem:[%s2058_s2 + $0x18c] ss:$48 sps:$4 sm:$0xff]   ;;  %v1470_v42 = vld [vmem:[%s2058_s2 + $0x180] ss:$48 sps:$4 sm:$0xff]   ;;  %v1473_v43 = vld [vmem:[%s2058_s2 + $0x188] ss:$48 sps:$4 sm:$0xff]  }
  0x10   :  { %1313 = vmatprep.subr.msk.bf16.mxu0 %vm140_vm0, %v1440_v17  ;;  %1315 = vmatprep.subr.msk.bf16.mxu1 %vm140_vm0, %v1442_v18  ;;  %v1478_v44 = vld [vmem:[%s2058_s2 + $0x1e4] ss:$48 sps:$4 sm:$0xff]   ;;  %v1481_v45 = vld [vmem:[%s2058_s2 + $0x1ec] ss:$48 sps:$4 sm:$0xff]   ;;  %v1476_v46 = vld [vmem:[%s2058_s2 + $0x1e0] ss:$48 sps:$4 sm:$0xff]  }
  0x11   :  { %v1479_v47 = vld [vmem:[%s2058_s2 + $0x1e8] ss:$48 sps:$4 sm:$0xff]  }
  0x13   :  { %162 = vmatpush1.bf16.msra.mxu0 %v142_v21  ;;  %203 = vmatpush1.bf16.msra.mxu1 %v148_v22 }
  0x14   :  { %819 = vmatprep.subr.bf16.mxu0 %v1448_v23  ;;  %860 = vmatprep.subr.bf16.mxu1 %v1451_v24 }
  0x16   :  { %1314 = vmatmul.mubr.msk.bf16.vlgmr.msra.gmra.mrb[0].mxu0 %vm136_vm1, %v19_v25  ;;  %1316 = vmatmul.mubr.msk.bf16.vlgmr.msra.gmra.mrb[0].mxu1 %vm136_vm1, %v19_v25 }
  0x17   :  { %820 = vmatpush1.bf16.msra.mxu0 %v1446_v26  ;;  %861 = vmatpush1.bf16.msra.mxu1 %v1449_v27 }
  0x18   :  { %821 = vmatprep.subr.bf16.mxu0 %v1454_v28  ;;  %862 = vmatprep.subr.bf16.mxu1 %v1457_v29 }
  0x19   :  { %851 = vmatprep.mubr.bf16.mxu0 %v1618_v2  ;;  %892 = vmatprep.mubr.bf16.mxu1 %v1618_v2 }
  0x1b   :  { %822 = vmatpush1.bf16.msra.mxu0 %v1452_v30  ;;  %863 = vmatpush1.bf16.msra.mxu1 %v1455_v31 }
  0x1c   :  { %823 = vmatprep.subr.bf16.mxu0 %v1460_v32  ;;  %864 = vmatprep.subr.bf16.mxu1 %v1463_v33 }
  0x1f   :  { %824 = vmatpush1.bf16.msra.mxu0 %v1458_v34  ;;  %865 = vmatpush1.bf16.msra.mxu1 %v1461_v35 }
  0x20   :  { %825 = vmatprep.subr.bf16.mxu0 %v1466_v36  ;;  %866 = vmatprep.subr.bf16.mxu1 %v1469_v37 }
  0x23   :  { %826 = vmatpush1.bf16.msra.mxu0 %v1464_v38  ;;  %867 = vmatpush1.bf16.msra.mxu1 %v1467_v39 }
  0x24   :  { %827 = vmatprep.subr.bf16.mxu0 %v1472_v40  ;;  %868 = vmatprep.subr.bf16.mxu1 %v1475_v41 }
  0x27   :  { %828 = vmatpush1.bf16.msra.mxu0 %v1470_v42  ;;  %869 = vmatpush1.bf16.msra.mxu1 %v1473_v43 }
  0x28   :  { %829 = vmatprep.subr.bf16.mxu0 %v1478_v44  ;;  %870 = vmatprep.subr.bf16.mxu1 %v1481_v45 }
  0x2b   :  { %830 = vmatpush1.bf16.msra.mxu0 %v1476_v46  ;;  %871 = vmatpush1.bf16.msra.mxu1 %v1479_v47 }
  0x2c   :  { %9 = vsyncpa [#allocation3], 0  ;;  %v1484_v48 = vld [vmem:[%s2058_s2 + $0x244] ss:$48 sps:$4 sm:$0xff]   ;;  %v1487_v49 = vld [vmem:[%s2058_s2 + $0x24c] ss:$48 sps:$4 sm:$0xff]  }
  0x2d   :  { %v1482_v50 = vld [vmem:[%s2058_s2 + $0x240] ss:$48 sps:$4 sm:$0xff]   ;;  %v1485_v51 = vld [vmem:[%s2058_s2 + $0x248] ss:$48 sps:$4 sm:$0xff]   ;;  %831 = vmatprep.subr.bf16.mxu0 %v1484_v48  ;;  %872 = vmatprep.subr.bf16.mxu1 %v1487_v49  ;;  %v1490_v52 = vld [vmem:[%s2058_s2 + $0x2a4] ss:$48 sps:$4 sm:$0xff]  }
  0x2e   :  { %v1493_v53 = vld [vmem:[%s2058_s2 + $0x2ac] ss:$48 sps:$4 sm:$0xff]   ;;  %v1488_v54 = vld [vmem:[%s2058_s2 + $0x2a0] ss:$48 sps:$4 sm:$0xff]   ;;  %v1491_v55 = vld [vmem:[%s2058_s2 + $0x2a8] ss:$48 sps:$4 sm:$0xff]  }
  0x2f   :  { %832 = vmatpush1.bf16.msra.mxu0 %v1482_v50  ;;  %873 = vmatpush1.bf16.msra.mxu1 %v1485_v51  ;;  %v1496_v56 = vld [vmem:[%s2058_s2 + $0x14] ss:$48 sps:$4 sm:$0xff]   ;;  %v1499_v57 = vld [vmem:[%s2058_s2 + $0x1c] ss:$48 sps:$4 sm:$0xff]   ;;  %v1494_v10 = vld [vmem:[%s2058_s2 + $0x10] ss:$48 sps:$4 sm:$0xff]  }
  0x30   :  { %833 = vmatprep.subr.bf16.mxu0 %v1490_v52  ;;  %874 = vmatprep.subr.bf16.mxu1 %v1493_v53  ;;  %v1497_v11 = vld [vmem:[%s2058_s2 + $0x18] ss:$48 sps:$4 sm:$0xff]   ;;  %v1502_v13 = vld [vmem:[%s2058_s2 + $0x74] ss:$48 sps:$4 sm:$0xff]   ;;  %v1505_v14 = vld [vmem:[%s2058_s2 + $0x7c] ss:$48 sps:$4 sm:$0xff]  }
  0x31   :  { %v1500_v15 = vld [vmem:[%s2058_s2 + $0x70] ss:$48 sps:$4 sm:$0xff]   ;;  %v1503_v16 = vld [vmem:[%s2058_s2 + $0x78] ss:$48 sps:$4 sm:$0xff]   ;;  %v1508_v17 = vld [vmem:[%s2058_s2 + $0xd4] ss:$48 sps:$4 sm:$0xff]  }
  0x32   :  { %v1511_v18 = vld [vmem:[%s2058_s2 + $0xdc] ss:$48 sps:$4 sm:$0xff]   ;;  %v1506_v19 = vld [vmem:[%s2058_s2 + $0xd0] ss:$48 sps:$4 sm:$0xff]   ;;  %v1509_v20 = vld [vmem:[%s2058_s2 + $0xd8] ss:$48 sps:$4 sm:$0xff]  }
  0x33   :  { %834 = vmatpush1.bf16.msra.mxu0 %v1488_v54  ;;  %875 = vmatpush1.bf16.msra.mxu1 %v1491_v55  ;;  %v1514_v21 = vld [vmem:[%s2058_s2 + $0x134] ss:$48 sps:$4 sm:$0xff]   ;;  %v1517_v22 = vld [vmem:[%s2058_s2 + $0x13c] ss:$48 sps:$4 sm:$0xff]   ;;  %v1512_v23 = vld [vmem:[%s2058_s2 + $0x130] ss:$48 sps:$4 sm:$0xff]  }
  0x34   :  { %901 = vmatprep.subr.bf16.mxu0 %v1496_v56  ;;  %942 = vmatprep.subr.bf16.mxu1 %v1499_v57  ;;  %v1515_v24 = vld [vmem:[%s2058_s2 + $0x138] ss:$48 sps:$4 sm:$0xff]   ;;  %v1520_v25 = vld [vmem:[%s2058_s2 + $0x194] ss:$48 sps:$4 sm:$0xff]   ;;  %v1523_v26 = vld [vmem:[%s2058_s2 + $0x19c] ss:$48 sps:$4 sm:$0xff]  }
  0x35   :  { %v1518_v27 = vld [vmem:[%s2058_s2 + $0x190] ss:$48 sps:$4 sm:$0xff]   ;;  %v1521_v28 = vld [vmem:[%s2058_s2 + $0x198] ss:$48 sps:$4 sm:$0xff]   ;;  %v1526_v29 = vld [vmem:[%s2058_s2 + $0x1f4] ss:$48 sps:$4 sm:$0xff]  }
  0x36   :  { %v1529_v30 = vld [vmem:[%s2058_s2 + $0x1fc] ss:$48 sps:$4 sm:$0xff]   ;;  %v1524_v31 = vld [vmem:[%s2058_s2 + $0x1f0] ss:$48 sps:$4 sm:$0xff]   ;;  %v1527_v32 = vld [vmem:[%s2058_s2 + $0x1f8] ss:$48 sps:$4 sm:$0xff]  }
  0x37   :  { %v1532_v33 = vld [vmem:[%s2058_s2 + $0x254] ss:$48 sps:$4 sm:$0xff]   ;;  %v1535_v34 = vld [vmem:[%s2058_s2 + $0x25c] ss:$48 sps:$4 sm:$0xff]   ;;  %v1530_v35 = vld [vmem:[%s2058_s2 + $0x250] ss:$48 sps:$4 sm:$0xff]  }
  0x38   :  { %v1533_v36 = vld [vmem:[%s2058_s2 + $0x258] ss:$48 sps:$4 sm:$0xff]   ;;  %v1538_v37 = vld [vmem:[%s2058_s2 + $0x2b4] ss:$48 sps:$4 sm:$0xff]   ;;  %v1541_v38 = vld [vmem:[%s2058_s2 + $0x2bc] ss:$48 sps:$4 sm:$0xff]  }
  0x39   :  { %v1536_v39 = vld [vmem:[%s2058_s2 + $0x2b0] ss:$48 sps:$4 sm:$0xff]   ;;  %v1539_v40 = vld [vmem:[%s2058_s2 + $0x2b8] ss:$48 sps:$4 sm:$0xff]   ;;  %v1544_v41 = vld [vmem:[%s2058_s2 + $0x24] ss:$48 sps:$4 sm:$0xff]  }
  0x3a   :  { %v1547_v42 = vld [vmem:[%s2058_s2 + $0x2c] ss:$48 sps:$4 sm:$0xff]   ;;  %v1542_v43 = vld [vmem:[%s2058_s2 + $0x20] ss:$48 sps:$4 sm:$0xff]   ;;  %v1545_v44 = vld [vmem:[%s2058_s2 + $0x28] ss:$48 sps:$4 sm:$0xff]  }
  0x3b   :  { %v1550_v45 = vld [vmem:[%s2058_s2 + $0x84] ss:$48 sps:$4 sm:$0xff]   ;;  %v1553_v46 = vld [vmem:[%s2058_s2 + $0x8c] ss:$48 sps:$4 sm:$0xff]   ;;  %v1548_v47 = vld [vmem:[%s2058_s2 + $0x80] ss:$48 sps:$4 sm:$0xff]  }
  0x3c   :  { %v1551_v48 = vld [vmem:[%s2058_s2 + $0x88] ss:$48 sps:$4 sm:$0xff]   ;;  %v1556_v49 = vld [vmem:[%s2058_s2 + $0xe4] ss:$48 sps:$4 sm:$0xff]   ;;  %v1559_v50 = vld [vmem:[%s2058_s2 + $0xec] ss:$48 sps:$4 sm:$0xff]  }
  0x3d   :  { %v1554_v51 = vld [vmem:[%s2058_s2 + $0xe0] ss:$48 sps:$4 sm:$0xff]   ;;  %v1557_v52 = vld [vmem:[%s2058_s2 + $0xe8] ss:$48 sps:$4 sm:$0xff]   ;;  %v1562_v53 = vld [vmem:[%s2058_s2 + $0x144] ss:$48 sps:$4 sm:$0xff]  }
  0x3e   :  { %v1560_v54 = vld [vmem:[%s2058_s2 + $0x140] ss:$48 sps:$4 sm:$0xff]   ;;  %v1563_v55 = vld [vmem:[%s2058_s2 + $0x148] ss:$48 sps:$4 sm:$0xff]   ;;  %v1568_v56 = vld [vmem:[%s2058_s2 + $0x1a4] ss:$48 sps:$4 sm:$0xff]  }
  0x3f   :  { %v1571_v57 = vld [vmem:[%s2058_s2 + $0x1ac] ss:$48 sps:$4 sm:$0xff]   ;;  %vm1258_vm2 = vcmask 1040384   ;;  %vm1264_vm4 = vcmask 1041408   ;;  %vm1277_vm5 = vcmask 74752  }
  0xe9   :  { %v187_v58 = vpop.f32.mrb[0].mxu0  ;;  %v228_v59 = vpop.f32.mrb[0].mxu1 }
  0xea   :  { %v235_v60 = vmax.f32 %v187_v58, 0.0  ;;  %v237_v61 = vmax.f32 %v228_v59, 0.0  ;;  %v189_v62 = vpop.f32.mrb[1].mxu0  ;;  %v230_v63 = vpop.f32.mrb[1].mxu1  ;;  %v1566_v58 = vld [vmem:[%s2058_s2 + $0x1a0] ss:$48 sps:$4 sm:$0xff]  }
  0xeb   :  { %v236_v0 = vmax.f32 %v189_v62, 0.0  ;;  %v238_v1 = vmax.f32 %v230_v63, 0.0  ;;  %v191_v3 = vpop.f32.mrb[2].mxu0  ;;  %v232_v4 = vpop.f32.mrb[2].mxu1  ;;  %v1569_v59 = vld [vmem:[%s2058_s2 + $0x1a8] ss:$48 sps:$4 sm:$0xff]  }
  0xec   :  { %v192_v5 = vpop.f32.mrb[3].mxu0  ;;  %v233_v6 = vpop.f32.mrb[3].mxu1  ;;  %v1572_v62 = vld [vmem:[%s2058_s2 + $0x200] ss:$48 sps:$4 sm:$0xff]   ;;  %v1575_v63 = vld [vmem:[%s2058_s2 + $0x208] ss:$48 sps:$4 sm:$0xff]  }
  0xed   :  { %v239_v7 = vmax.f32 %v235_v60, %v236_v0  ;;  %v240_v8 = vmax.f32 %v237_v61, %v238_v1  ;;  %v1574_v60 = vld [vmem:[%s2058_s2 + $0x204] ss:$48 sps:$4 sm:$0xff]   ;;  %v1577_v61 = vld [vmem:[%s2058_s2 + $0x20c] ss:$48 sps:$4 sm:$0xff]   ;;  %v1578_v3 = vld [vmem:[%s2058_s2 + $0x260] ss:$48 sps:$4 sm:$0xff]  }
  0xee   :  { %v1580_v0 = vld [vmem:[%s2058_s2 + $0x264] ss:$48 sps:$4 sm:$0xff]   ;;  %v1583_v1 = vld [vmem:[%s2058_s2 + $0x26c] ss:$48 sps:$4 sm:$0xff]   ;;  %v1581_v4 = vld [vmem:[%s2058_s2 + $0x268] ss:$48 sps:$4 sm:$0xff]  }
  0xef   :  { %v241_v9 = vmax.f32 %v239_v7, %v240_v8  ;;  %v1586_v5 = vld [vmem:[%s2058_s2 + $0x2c4] ss:$48 sps:$4 sm:$0xff]   ;;  %v1589_v6 = vld [vmem:[%s2058_s2 + $0x2cc] ss:$48 sps:$4 sm:$0xff]   ;;  %v1584_v7 = vld [vmem:[%s2058_s2 + $0x2c0] ss:$48 sps:$4 sm:$0xff]  }
  0xf0   :  { %v1587_v8 = vld [vmem:[%s2058_s2 + $0x2c8] ss:$48 sps:$4 sm:$0xff]  }
  0xf1   :  { %v1821_v12 = vpack.c.bf16 %v241_v9, %v241_v9  ;;  %v1619_v9 = vmov 1966171168  }
  0xf3   :  { %852 = vmatmul.mubr.bf16.vlgmr.msra.gmra.mrb[4].mxu0 %v1821_v12  ;;  %893 = vmatmul.mubr.bf16.vlgmr.msra.gmra.mrb[4].mxu1 %v1821_v12 }
  0xf4   :  { %902 = vmatpush1.bf16.msra.mxu0 %v1494_v10  ;;  %943 = vmatpush1.bf16.msra.mxu1 %v1497_v11  ;;  %v1069_v10 = vunpack.c.l.s4 %v1619_v9  ;;  %v1071_v11 = vlaneseq }
  0xf5   :  { %903 = vmatprep.subr.bf16.mxu0 %v1502_v13  ;;  %944 = vmatprep.subr.bf16.mxu1 %v1505_v14 }
  0xf6   :  { %933 = vmatprep.mubr.bf16.mxu0 %v1618_v2  ;;  %974 = vmatprep.mubr.bf16.mxu1 %v1618_v2  ;;  %v1070_v13 = vunpack.c.0.s8 %v1069_v10  ;;  %v2014_v14 = vshrl.u32 %v1071_v11, 7 }
  0xf8   :  { %904 = vmatpush1.bf16.msra.mxu0 %v1500_v15  ;;  %945 = vmatpush1.bf16.msra.mxu1 %v1503_v16  ;;  %v2017_v15 = vsub.s32 %v1070_v13, %v2014_v14 }
  0xf9   :  { %905 = vmatprep.subr.bf16.mxu0 %v1508_v17  ;;  %946 = vmatprep.subr.bf16.mxu1 %v1511_v18 }
  0xfc   :  { %906 = vmatpush1.bf16.msra.mxu0 %v1506_v19  ;;  %947 = vmatpush1.bf16.msra.mxu1 %v1509_v20 }
  0xfd   :  { %907 = vmatprep.subr.bf16.mxu0 %v1514_v21  ;;  %948 = vmatprep.subr.bf16.mxu1 %v1517_v22 }
 0x100   :  { %908 = vmatpush1.bf16.msra.mxu0 %v1512_v23  ;;  %949 = vmatpush1.bf16.msra.mxu1 %v1515_v24  ;;  %v1065_v24 = vld [vmem:[%s2059_s3] sm:$0x1]  ;;  %s1620_s3 = smov [#allocation2]  }
 0x101   :  { %909 = vmatprep.subr.bf16.mxu0 %v1520_v25  ;;  %950 = vmatprep.subr.bf16.mxu1 %v1523_v26  ;;  %s1285_s28 = sshll.u32 %s1620_s3, 4  ;;  %s1286_s28 = int_to_ptr.vmem [resolvable:$true] %s1285_s28 }
 0x102   :  { %s1594_s29 = scalar_lea.vmem %s1286_s28, 32  ;;  %p1599_p1 = scmp.lt.s32.totalorder %s1286_s28, %s1286_s28 }
 0x103   :  { %p1595_p0 = scmp.ne.s32.totalorder %s1286_s28, %s1594_s29  ;;  %p1600_p2 = scmp.lt.s32.totalorder %s1594_s29, %s1594_s29 }
 0x104   :  { %910 = vmatpush1.bf16.msra.mxu0 %v1518_v27  ;;  %951 = vmatpush1.bf16.msra.mxu1 %v1521_v28 }
 0x105   :  { %911 = vmatprep.subr.bf16.mxu0 %v1526_v29  ;;  %952 = vmatprep.subr.bf16.mxu1 %v1529_v30  ;;  %p1601_p3 = por %p1600_p2, %p1599_p1 }
 0x107   :  { %p1602_p4 = pnand %p1601_p3, %p1595_p0 }
 0x108   :  { %912 = vmatpush1.bf16.msra.mxu0 %v1524_v31  ;;  %953 = vmatpush1.bf16.msra.mxu1 %v1527_v32 }
 0x109   :  { %913 = vmatprep.subr.bf16.mxu0 %v1532_v33  ;;  %954 = vmatprep.subr.bf16.mxu1 %v1535_v34 }
 0x10c   :  { %914 = vmatpush1.bf16.msra.mxu0 %v1530_v35  ;;  %955 = vmatpush1.bf16.msra.mxu1 %v1533_v36 }
 0x10d   :  { %915 = vmatprep.subr.bf16.mxu0 %v1538_v37  ;;  %956 = vmatprep.subr.bf16.mxu1 %v1541_v38 }
 0x110   :  { %916 = vmatpush1.bf16.msra.mxu0 %v1536_v39  ;;  %957 = vmatpush1.bf16.msra.mxu1 %v1539_v40 }
 0x111   :  { %983 = vmatprep.subr.bf16.mxu0 %v1544_v41  ;;  %1024 = vmatprep.subr.bf16.mxu1 %v1547_v42 }
 0x113   :  { %934 = vmatmul.mubr.bf16.vlgmr.msra.gmra.mrb[8].mxu0 %v1821_v12  ;;  %975 = vmatmul.mubr.bf16.vlgmr.msra.gmra.mrb[8].mxu1 %v1821_v12 }
 0x114   :  { %984 = vmatpush1.bf16.msra.mxu0 %v1542_v43  ;;  %1025 = vmatpush1.bf16.msra.mxu1 %v1545_v44 }
 0x115   :  { %985 = vmatprep.subr.bf16.mxu0 %v1550_v45  ;;  %1026 = vmatprep.subr.bf16.mxu1 %v1553_v46 }
 0x116   :  { %1015 = vmatprep.mubr.bf16.mxu0 %v1618_v2  ;;  %1056 = vmatprep.mubr.bf16.mxu1 %v1618_v2  ;;  %v1565_v2 = vld [vmem:[%s2058_s2 + $0x14c] ss:$48 sps:$4 sm:$0xff]  }
 0x118   :  { %986 = vmatpush1.bf16.msra.mxu0 %v1548_v47  ;;  %1027 = vmatpush1.bf16.msra.mxu1 %v1551_v48 }
 0x119   :  { %987 = vmatprep.subr.bf16.mxu0 %v1556_v49  ;;  %1028 = vmatprep.subr.bf16.mxu1 %v1559_v50 }
 0x11c   :  { %988 = vmatpush1.bf16.msra.mxu0 %v1554_v51  ;;  %1029 = vmatpush1.bf16.msra.mxu1 %v1557_v52 }
 0x11d   :  { %989 = vmatprep.subr.bf16.mxu0 %v1562_v53  ;;  %1030 = vmatprep.subr.bf16.mxu1 %v1565_v2 }
 0x120   :  { %990 = vmatpush1.bf16.msra.mxu0 %v1560_v54  ;;  %1031 = vmatpush1.bf16.msra.mxu1 %v1563_v55 }
 0x121   :  { %991 = vmatprep.subr.bf16.mxu0 %v1568_v56  ;;  %1032 = vmatprep.subr.bf16.mxu1 %v1571_v57 }
 0x124   :  { %992 = vmatpush1.bf16.msra.mxu0 %v1566_v58  ;;  %1033 = vmatpush1.bf16.msra.mxu1 %v1569_v59 }
 0x125   :  { %993 = vmatprep.subr.bf16.mxu0 %v1574_v60  ;;  %1034 = vmatprep.subr.bf16.mxu1 %v1577_v61 }
 0x128   :  { %994 = vmatpush1.bf16.msra.mxu0 %v1572_v62  ;;  %1035 = vmatpush1.bf16.msra.mxu1 %v1575_v63 }
 0x129   :  { %995 = vmatprep.subr.bf16.mxu0 %v1580_v0  ;;  %1036 = vmatprep.subr.bf16.mxu1 %v1583_v1 }
 0x12c   :  { %996 = vmatpush1.bf16.msra.mxu0 %v1578_v3  ;;  %1037 = vmatpush1.bf16.msra.mxu1 %v1581_v4 }
 0x12d   :  { %997 = vmatprep.subr.bf16.mxu0 %v1586_v5  ;;  %1038 = vmatprep.subr.bf16.mxu1 %v1589_v6 }
 0x130   :  { %998 = vmatpush1.bf16.msra.mxu0 %v1584_v7  ;;  %1039 = vmatpush1.bf16.msra.mxu1 %v1587_v8 }
 0x133   :  { %1016 = vmatmul.mubr.bf16.vlgmr.msra.gmra.mrb[12].mxu0 %v1821_v12  ;;  %1057 = vmatmul.mubr.bf16.vlgmr.msra.gmra.mrb[12].mxu1 %v1821_v12 }
 0x1c6   :  { %v853_v16 = vpop.f32.mrb[4].mxu0  ;;  %v894_v17 = vpop.f32.mrb[4].mxu1 }
 0x1c7   :  { %v1092_v18 = vrot.slane %v894_v17, %v2017_v15  ;;  %v855_v19 = vpop.f32.mrb[5].mxu0  ;;  %v896_v20 = vpop.f32.mrb[5].mxu1  ;;  %v1066_v30 = vadd.f32 %v1065_v24, %v853_v16 }
 0x1c8   :  { %v1074_v21 = vrot.slane %v855_v19, %v2017_v15  ;;  %v1110_v12 = vrot.slane %v896_v20, %v2017_v15  ;;  %v857_v22 = vpop.f32.mrb[6].mxu0  ;;  %v898_v23 = vpop.f32.mrb[6].mxu1 }
 0x1c9   :  { %v858_v25 = vpop.f32.mrb[7].mxu0  ;;  %v899_v26 = vpop.f32.mrb[7].mxu1  ;;  %v1099_v27 = vrot.slane %v1092_v18, %v2017_v15 }
 0x1ca   :  { %v1075_v28 = vcombine.high %v1074_v21, %v1074_v21  ;;  %v1111_v29 = vcombine.high %v1110_v12, %v1110_v12  ;;  %v1261_v25 = vand.u32 127, %v1071_v11 }
 0x1cb   :  { %v1100_v33 = vcombine.high %v1099_v27, %v1099_v27 }
 0x1cc   :  { %v1082_v31 = vrot.slane %v1075_v28, %v2017_v15  ;;  %v1118_v32 = vrot.slane %v1111_v29, %v2017_v15  ;;  %vm1262_vm3 = vcmp.lt.s32.totalorder %v1261_v25, 10 }
 0x1ce   :  { %v1084_v34 = vadd.f32 %v1082_v31, %v1066_v30  ;;  %v1119_v36 = vcombine.high %v1118_v32, %v1118_v32 }
 0x1d0   :  { %v1102_v35 = vadd.f32 %v1100_v33, %v1084_v34 }
 0x1d2   :  { %v1121_v37 = vadd.f32 %v1119_v36, %v1102_v35 }
 0x1e6   :  { %v935_v38 = vpop.f32.mrb[8].mxu0  ;;  %v976_v39 = vpop.f32.mrb[8].mxu1 }
 0x1e7   :  { %v1123_v40 = vcombine.high %v935_v38, %v935_v38  ;;  %v937_v41 = vpop.f32.mrb[9].mxu0  ;;  %v978_v42 = vpop.f32.mrb[9].mxu1  ;;  %v1159_v53 = vadd.f32 %v1065_v24, %v976_v39  ;;  %v1255_v24 = vsub.s32 0, %v2014_v14 }
 0x1e8   :  { %v1141_v43 = vcombine.high %v937_v41, %v937_v41  ;;  %v1167_v44 = vrot.slane %v978_v42, %v2017_v15  ;;  %v939_v45 = vpop.f32.mrb[10].mxu0  ;;  %v980_v46 = vpop.f32.mrb[10].mxu1 }
 0x1e9   :  { %v1130_v47 = vrot.slane %v1123_v40, %v2017_v15  ;;  %v940_v48 = vpop.f32.mrb[11].mxu0  ;;  %v981_v49 = vpop.f32.mrb[11].mxu1 }
 0x1ea   :  { %v1148_v50 = vrot.slane %v1141_v43, %v2017_v15  ;;  %v1168_v51 = vcombine.high %v1167_v44, %v1167_v44 }
 0x1eb   :  { %v1137_v52 = vrot.slane %v1130_v47, %v2017_v15 }
 0x1ec   :  { %v1149_v2 = vcombine.high %v1148_v50, %v1148_v50  ;;  %v1175_v54 = vrot.slane %v1168_v51, %v2017_v15 }
 0x1ed   :  { %v1139_v55 = vadd.f32 %v1137_v52, %v1121_v37 }
 0x1ee   :  { %v1156_v56 = vrot.slane %v1149_v2, %v2017_v15  ;;  %v1177_v57 = vadd.f32 %v1175_v54, %v1159_v53 }
 0x1f0   :  { %v1158_v58 = vadd.f32 %v1156_v56, %v1139_v55 }
 0x206   :  { %v1017_v59 = vpop.f32.mrb[12].mxu0  ;;  %v1058_v60 = vpop.f32.mrb[12].mxu1 }
 0x207   :  { %v1185_v61 = vrot.slane %v1017_v59, %v2017_v15  ;;  %v1019_v62 = vpop.f32.mrb[13].mxu0  ;;  %v1060_v63 = vpop.f32.mrb[13].mxu1  ;;  %v1216_v0 = vcombine.high %v1058_v60, %v1058_v60 }
 0x208   :  { %v1203_v1 = vrot.slane %v1019_v62, %v2017_v15  ;;  %v1234_v3 = vcombine.high %v1060_v63, %v1060_v63  ;;  %v1021_v4 = vpop.f32.mrb[14].mxu0  ;;  %v1062_v5 = vpop.f32.mrb[14].mxu1 }
 0x209   :  { %v1192_v6 = vrot.slane %v1185_v61, %v2017_v15  ;;  %v1022_v7 = vpop.f32.mrb[15].mxu0  ;;  %v1063_v8 = vpop.f32.mrb[15].mxu1  ;;  %v1223_v16 = vrot.slane %v1216_v0, %v2017_v15 }
 0x20a   :  { %v1204_v9 = vcombine.high %v1203_v1, %v1203_v1  ;;  %v1241_v10 = vrot.slane %v1234_v3, %v2017_v15 }
 0x20b   :  { %v1193_v13 = vcombine.high %v1192_v6, %v1192_v6  ;;  %v1230_v21 = vrot.slane %v1223_v16, %v2017_v15 }
 0x20c   :  { %v1211_v17 = vrot.slane %v1204_v9, %v2017_v15  ;;  %v1242_v20 = vcombine.high %v1241_v10, %v1241_v10 }
 0x20d   :  { %v1195_v18 = vadd.f32 %v1193_v13, %v1177_v57 }
 0x20e   :  { %v1212_v19 = vcombine.high %v1211_v17, %v1211_v17  ;;  %v1249_v23 = vrot.slane %v1242_v20, %v2017_v15 }
 0x210   :  { %v1214_v12 = vadd.f32 %v1212_v19, %v1195_v18 }
 0x212   :  { %v1232_v22 = vadd.f32 %v1230_v21, %v1214_v12 }
 0x214   :  { %v1251_v26 = vadd.f32 %v1249_v23, %v1232_v22 }
 0x216   :  { %v1256_v27 = vrot.slane %v1251_v26, %v1255_v24 }
 0x218   :  { %v1259_v28 = vsel %vm1258_vm2, %v1158_v58, %v1256_v27 }
 0x219   :  { %v1263_v29 = vsel %vm1262_vm3, %v1259_v28, -inf }
 0x21a   :  { %v1265_v30 = vsel %vm1264_vm4, %v1263_v29, -inf }
 0x21b   :  { %1266 = vmax.xlane.f32.xlu0 %v1265_v30 }
 0x2a8   :  { %v1267_v31 = vpop.xlane.xlu0 %1266 }
 0x2a9   :  { %v1268_v32 = vsub.f32 %v1259_v28, %v1267_v31 }
 0x2ab   :  { %v1269_v33 = vmul.f32 1.442695, %v1268_v32 }
 0x2ad   :  { %1590 = vpow2.f32 %v1269_v33 }
 0x2b7   :  { %v1591_v34 = vpop.eup %1590 }
 0x2b8   :  { %v1271_v35 = vsel %vm1262_vm3, %v1591_v34, 0.0 }
 0x2b9   :  { %v1272_v15 = vsel %vm1264_vm4, %v1271_v35, 0.0 }
 0x2ba   :  { %1273 = vadd.xlane.f32.xlu0 %v1272_v15 }
 0x347   :  { %v1274_v14 = vpop.xlane.xlu0 %1273 }
 0x348   :  { %1592 = vrcp.f32 %v1274_v14 }
 0x352   :  { %v1593_v11 = vpop.eup %1592 }
 0x353   :  { %v1276_v36 = vmul.f32 %v1593_v11, %v1271_v35 }
 0x355   :  { %1278 = vst.msk [vmem:[#allocation2] sm:$0x3] %vm1277_vm5, %v1276_v36 }
 0x356   :  { %1605 = shalt.err (!%p1602_p4)
}
 0x357   :  { %s1606_s6 = scalar_lea.hbm %s2060_s4, 32 }
 0x358   :  { %p1607_p5 = scmp.ne.s32.totalorder %s2060_s4, %s1606_s6  ;;  %p1610_p6 = scmp.lt.u32.totalorder %s1606_s6, %s2060_s4 }
 0x35a   :  { %p1612_p7 = pnand %p1610_p6, %p1607_p5 }
 0x35c   :  { %1615 = shalt.err (!%p1612_p7)
}
 0x35d   :  { %1288 = dma.vmem_to_hbm [thread:$0]  %s1286_s28, 32, %s2060_s4, [#allocation3]  }
 0x35e   :  { %1616 = dma.done.wait [#allocation3], 32  }
 0x35f   :  { %1617 = vsyncadd [#allocation3], 4294967264 }
 0x360   :  { %1292 = vsyncpa [#allocation3], 1 }

</bundles_post_ra>
